<compile_context>
chip_gen: v7x
topology: tpu7x:2x2x1
jax: 0.10.0
libtpu: 0.0.40
codegen_flags: <defaults>
</compile_context>

<pallas_src>
import jax
import jax.numpy as jnp
from jax.experimental import pallas as pl
from jax.experimental.pallas import tpu as pltpu

CL = 40  # params['cl']


def _contrastive_loss_kernel(scale_ref, label_ref, x_ref, loss_ref):
    # scale_ref : SMEM (1, 1) f32       -> 1 / temperature
    # label_ref : VMEM (1, TILE_B) i32   (labels on the lane axis)
    # x_ref     : VMEM (TILE_B, CL)      (raw row block of the [B, CL] input)
    # loss_ref  : VMEM (1, TILE_B) f32   (per-sample loss, lane dense)
    inv_t = scale_ref[0, 0]

    # classes -> sublanes, samples -> dense 128-wide lanes
    x = jnp.transpose(x_ref[...].astype(jnp.float32)) * inv_t          # (CL, TILE_B)
    cl, tb = x.shape

    # one-hot positive mask from a lane-invariant class iota
    class_ids = jax.lax.broadcasted_iota(jnp.int32, (cl, 1), 0)        # (CL, 1)
    pos_mask = class_ids == label_ref[...]                             # (CL, TILE_B)

    # positive scaled logit per sample
    pos = jnp.sum(jnp.where(pos_mask, x, 0.0), axis=0, keepdims=True)  # (1, TILE_B)

    # stabilized sum of exp over the CL-1 negative classes
    m = jnp.max(x, axis=0, keepdims=True)                              # (1, TILE_B)
    exps = jnp.exp(x - m)                                              # (CL, TILE_B)
    neg_sum = jnp.sum(jnp.where(pos_mask, 0.0, exps), axis=0, keepdims=True)

    # loss_i = log(sum_{j != label_i} exp(x_ij/T)) - x_{i,label_i}/T
    loss_ref[...] = jnp.log(neg_sum) + m - pos


def contrastive_loss(x, label, temperature, *, tile_b=16384):
    """x: [B, CL] float logits, label: [B] int class ids, temperature: scalar."""
    b, cl = x.shape
    assert cl == CL
    assert tile_b % 128 == 0

    # lane-aligned batch tile; don't over-pad small batches
    tile_b = min(tile_b, pl.cdiv(b, 128) * 128)
    n_tiles = pl.cdiv(b, tile_b)

    inv_t = (1.0 / jnp.asarray(temperature, dtype=jnp.float32)).reshape(1, 1)
    labels = label.astype(jnp.int32).reshape(1, b)

    per_sample = pl.pallas_call(
        _contrastive_loss_kernel,
        out_shape=jax.ShapeDtypeStruct((1, b), jnp.float32),
        grid_spec=pltpu.PrefetchScalarGridSpec(
            num_scalar_prefetch=0,
            grid=(n_tiles,),
            in_specs=[
                pl.BlockSpec(memory_space=pltpu.SMEM),            # 1/T scalar
                pl.BlockSpec((1, tile_b), lambda i: (0, i)),      # labels (lanes)
                pl.BlockSpec((tile_b, CL), lambda i: (i, 0)),     # contiguous row block
            ],
            out_specs=pl.BlockSpec((1, tile_b), lambda i: (0, i)),
        ),
        compiler_params=pltpu.CompilerParams(
            dimension_semantics=("parallel",),
            vmem_limit_bytes=64 << 20),
    )(inv_t, labels, x)

    # final mean over exactly B samples (negligible work) in plain JAX
    return jnp.mean(per_sample)


def contrastive_loss_ref(x, label, temperature):
    # pure-JAX reference mirroring the PyTorch forward
    pos_mask = jax.nn.one_hot(label, CL, dtype=x.dtype)
    pos = jnp.sum(x * pos_mask, axis=1) / temperature
    exps = jnp.exp(x / temperature)
    neg = jnp.sum(jnp.where(pos_mask > 0, 0.0, exps), axis=1)
    return jnp.mean(-(pos - jnp.log(neg)))


if __name__ == "__main__":
    key = jax.random.PRNGKey(0)
    temperature = 0.5
    k1, k2, k3, k4 = jax.random.split(key, 4)

    # Case 1: small single-tile batch (tile clamps to 128 lanes)
    B1 = 8
    x1 = jax.random.normal(k1, (B1, CL), dtype=jnp.float32)
    y1 = jax.random.randint(k2, (B1,), 0, CL, dtype=jnp.int32)
    loss1 = contrastive_loss(x1, y1, temperature)
    jax.block_until_ready(loss1)
    ref1 = contrastive_loss_ref(x1, y1, temperature)
    assert jnp.allclose(loss1, ref1, rtol=1e-4, atol=1e-5), (loss1, ref1)

    # Case 2: multi-tile batch with a ragged tail (exercises the parallel grid
    # and out-of-bounds block clamping on both inputs and the output)
    B2 = 300
    x2 = jax.random.normal(k3, (B2, CL), dtype=jnp.float32)
    y2 = jax.random.randint(k4, (B2,), 0, CL, dtype=jnp.int32)
    loss2 = contrastive_loss(x2, y2, temperature, tile_b=128)
    jax.block_until_ready(loss2)
    ref2 = contrastive_loss_ref(x2, y2, temperature)
    assert jnp.allclose(loss2, ref2, rtol=1e-4, atol=1e-5), (loss2, ref2)

    print("KERNEL_OK")
</pallas_src>

<mosaic_0001>
module attributes {stable_mosaic.version = 11 : i64} {
  func.func @_contrastive_loss_kernel(%arg0: i32, %arg1: memref<1x1xf32, #tpu.memory_space<smem>>, %arg2: memref<1x128xi32, #tpu.memory_space<vmem>>, %arg3: memref<128x40xf32, #tpu.memory_space<vmem>>, %arg4: memref<1x128xf32, #tpu.memory_space<vmem>>) attributes {dimension_semantics = [#tpu.dimension_semantics<parallel>], iteration_bounds = array<i64: 1>, scalar_prefetch = 0 : i64, scratch_operands = 0 : i64, tpu.core_type = #tpu.core_type<tc>, window_params = [{transform_indices = @transform_0, window_bounds = array<i64: 1, 1>}, {transform_indices = @transform_1, window_bounds = array<i64: 1, 128>}, {transform_indices = @transform_2, window_bounds = array<i64: 128, 40>}, {transform_indices = @transform_3, window_bounds = array<i64: 1, 128>}]} {
    %c0 = arith.constant 0 : index
    %c0_0 = arith.constant 0 : index
    %0 = memref.load %arg1[%c0, %c0_0] : memref<1x1xf32, #tpu.memory_space<smem>>
    %c0_1 = arith.constant 0 : index
    %c0_2 = arith.constant 0 : index
    %1 = vector.load %arg3[%c0_1, %c0_2] : memref<128x40xf32, #tpu.memory_space<vmem>>, vector<128x40xf32>
    %2 = tpu.transpose %1, [1, 0] : vector<128x40xf32> -> vector<40x128xf32>
    %3 = vector.broadcast %0 : f32 to vector<40x128xf32>
    %4 = arith.mulf %2, %3 : vector<40x128xf32>
    %5 = tpu.iota {dimensions = array<i32: 0>} : vector<40x1xi32>
    %c0_3 = arith.constant 0 : index
    %c0_4 = arith.constant 0 : index
    %6 = vector.load %arg2[%c0_3, %c0_4] : memref<1x128xi32, #tpu.memory_space<vmem>>, vector<1x128xi32>
    %7 = vector.broadcast %5 : vector<40x1xi32> to vector<40x128xi32>
    %8 = vector.broadcast %6 : vector<1x128xi32> to vector<40x128xi32>
    %9 = arith.cmpi eq, %7, %8 : vector<40x128xi32>
    %cst = arith.constant 0.000000e+00 : f32
    %10 = vector.broadcast %cst : f32 to vector<40x128xf32>
    %11 = arith.select %9, %4, %10 : vector<40x128xi1>, vector<40x128xf32>
    %cst_5 = arith.constant dense<0.000000e+00> : vector<128xf32>
    %12 = vector.multi_reduction <add>, %11, %cst_5 [0] : vector<40x128xf32> to vector<128xf32>
    %13 = vector.shape_cast %12 : vector<128xf32> to vector<1x128xf32>
    %cst_6 = arith.constant dense<0xFF800000> : vector<128xf32>
    %14 = vector.multi_reduction <maximumf>, %4, %cst_6 [0] : vector<40x128xf32> to vector<128xf32>
    %15 = vector.shape_cast %14 : vector<128xf32> to vector<1x128xf32>
    %16 = vector.broadcast %15 : vector<1x128xf32> to vector<40x128xf32>
    %17 = arith.subf %4, %16 : vector<40x128xf32>
    %18 = math.exp %17 : vector<40x128xf32>
    %cst_7 = arith.constant 0.000000e+00 : f32
    %19 = vector.broadcast %cst_7 : f32 to vector<40x128xf32>
    %20 = arith.select %9, %19, %18 : vector<40x128xi1>, vector<40x128xf32>
    %cst_8 = arith.constant dense<0.000000e+00> : vector<128xf32>
    %21 = vector.multi_reduction <add>, %20, %cst_8 [0] : vector<40x128xf32> to vector<128xf32>
    %22 = vector.shape_cast %21 : vector<128xf32> to vector<1x128xf32>
    %23 = math.log %22 : vector<1x128xf32>
    %24 = arith.addf %23, %15 : vector<1x128xf32>
    %25 = arith.subf %24, %13 : vector<1x128xf32>
    %c0_9 = arith.constant 0 : index
    %c0_10 = arith.constant 0 : index
    %26 = vector.load %arg4[%c0_9, %c0_10] : memref<1x128xf32, #tpu.memory_space<vmem>>, vector<1x128xf32>
    tpu.vector_store %arg4[%c0_9, %c0_10], %25 {strides = array<i32>} : memref<1x128xf32, #tpu.memory_space<vmem>>, vector<1x128xf32>,
    return
  }
  func.func @transform_0(%arg0: i32) -> (i32, i32) {
    %c0_i32 = arith.constant 0 : i32
    %c0_i32_0 = arith.constant 0 : i32
    %c0_i32_1 = arith.constant 0 : i32
    return %c0_i32, %c0_i32_0 : i32, i32
  }
  func.func @transform_1(%arg0: i32) -> (i32, i32) {
    %c0_i32 = arith.constant 0 : i32
    %c0_i32_0 = arith.constant 0 : i32
    return %c0_i32, %arg0 : i32, i32
  }
  func.func @transform_2(%arg0: i32) -> (i32, i32) {
    %c0_i32 = arith.constant 0 : i32
    %c0_i32_0 = arith.constant 0 : i32
    return %arg0, %c0_i32 : i32, i32
  }
  func.func @transform_3(%arg0: i32) -> (i32, i32) {
    %c0_i32 = arith.constant 0 : i32
    %c0_i32_0 = arith.constant 0 : i32
    return %c0_i32, %arg0 : i32, i32
  }
}

</mosaic_0001>

<bundles_post_ra>
// kernel: tpu_custom_call.1
= control target key start
LH: loop header
LB: loop body
LE: loop exit
PB: predicated region body
PF: predicated region fallthrough
CT: control target
= control target key end

     0   :  { %9 = vsyncpa [#allocation4], 0  ;;  %s351_s0 = inlined_call_operand.<no memory space> [shape: f32[1,1], index: 0, kind: input, shape index: {}]   ;;  %s352_s1 = inlined_call_operand.hbm [shape: s32[1,8], index: 1, kind: input, shape index: {}]   ;;  %s353_s2 = inlined_call_operand.hbm [shape: f32[8,40], index: 2, kind: input, shape index: {}]   ;;  %s354_s3 = inlined_call_operand.hbm [shape: f32[1,8], index: 3, kind: output, shape index: {}]  }
   0x1   :  { %10 = vsyncpa [#allocation7], 0 }
   0x2   :  { %11 = vsyncpa [#allocation5], 0  ;;  %s279_s12 = smov [#allocation3]   ;;  %s207_s16 = scalar_lea.hbm %s352_s1, 16 }
   0x3   :  { %s20_s13 = sshll.u32 %s279_s12, 4  ;;  %p208_p0 = scmp.ne.s32.totalorder %s352_s1, %s207_s16  ;;  %s21_s13 = int_to_ptr.vmem [resolvable:$true] %s20_s13 }
   0x4   :  { %p211_p1 = scmp.lt.u32.totalorder %s207_s16, %s352_s1 }
   0x6   :  { %p213_p2 = pnand %p211_p1, %p208_p0 }
   0x8   :  { %216 = shalt.err (!%p213_p2)
}
   0x9   :  { %s217_s21 = scalar_lea.vmem %s21_s13, 16  ;;  %s221_s22 = scalar_lea.vmem %s21_s13, 32 }
   0xa   :  { %p218_p3 = scmp.ne.s32.totalorder %s21_s13, %s217_s21  ;;  %p222_p4 = scmp.lt.s32.totalorder %s21_s13, %s21_s13 }
   0xb   :  { %p223_p5 = scmp.lt.s32.totalorder %s221_s22, %s217_s21 }
   0xd   :  { %p224_p6 = por %p223_p5, %p222_p4 }
   0xf   :  { %p225_p7 = pnand %p224_p6, %p218_p3 }
  0x11   :  { %228 = shalt.err (!%p225_p7)
}
  0x12   :  { %23 = dma.hbm_to_vmem [thread:$0]  %s352_s1, 16, %s21_s13, [#allocation4]  }
  0x13   :  { %28 = vsyncadd [#allocation7], 1920  ;;  %s280_s25 = smov [#allocation6]   ;;  %s229_s29 = scalar_lea.hbm %s353_s2, 128 }
  0x14   :  { %s29_s26 = sshll.u32 %s280_s25, 4  ;;  %p230_p8 = scmp.ne.s32.totalorder %s353_s2, %s229_s29  ;;  %s30_s26 = int_to_ptr.vmem [resolvable:$true] %s29_s26 }
  0x15   :  { %p233_p9 = scmp.lt.u32.totalorder %s229_s29, %s353_s2 }
  0x17   :  { %p235_p10 = pnand %p233_p9, %p230_p8 }
  0x19   :  { %238 = shalt.err (!%p235_p10)
}
  0x1a   :  { %s239_s7 = scalar_lea.vmem %s30_s26, 128  ;;  %s243_s1 = scalar_lea.vmem %s30_s26, 2048 }
  0x1b   :  { %p240_p11 = scmp.ne.s32.totalorder %s30_s26, %s239_s7  ;;  %p244_p12 = scmp.lt.s32.totalorder %s30_s26, %s30_s26 }
  0x1c   :  { %p245_p13 = scmp.lt.s32.totalorder %s243_s1, %s239_s7 }
  0x1e   :  { %p246_p0 = por %p245_p13, %p244_p12 }
  0x20   :  { %p247_p1 = pnand %p246_p0, %p240_p11 }
  0x22   :  { %250 = shalt.err (!%p247_p1)
}
  0x23   :  { %s281_s8 = smov 128   ;;  %s282_s9 = smov 8  }
  0x24   :  { %35 = dma.hbm_to_vmem [thread:$0]  %s353_s2, 128, %s30_s26, [#allocation7], %s281_s8, %s281_s8, %s282_s9  }
  0x25   :  { %273 = dma.done.wait [#allocation4], 16  }
  0x26   :  { %274 = vsyncadd [#allocation4], 4294967280 }
  0x27   :  { %275 = dma.done.wait [#allocation7], 2048  }
  0x28   :  { %276 = vsyncadd [#allocation7], 4294965248  ;;  %v43_v0 = vld [vmem:[#allocation6] sm:$0xff]  ;;  %v44_v1 = vld [vmem:[#allocation6 + $0x8] sm:$0xff]  ;;  %v91_v20 = vstv %s351_s0  ;;  %v97_v46 = vlaneseq  ;;  %s283_s0 = smov [#allocation8]  }
  0x29   :  { %59 = vxpose.xlu0.b32.start [1/16] (narrow) %v43_v0, 40  ;;  %v45_v2 = vld [vmem:[#allocation6 + $0x10] sm:$0xff]  ;;  %v46_v3 = vld [vmem:[#allocation6 + $0x18] sm:$0xff]  ;;  %v47_v4 = vld [vmem:[#allocation6 + $0x20] sm:$0xff]  ;;  %s179_s13 = sshll.u32 %s283_s0, 4  ;;  %s180_s13 = int_to_ptr.vmem [resolvable:$true] %s179_s13 }
  0x2a   :  { %v48_v5 = vld [vmem:[#allocation6 + $0x28] sm:$0xff]  ;;  %v49_v6 = vld [vmem:[#allocation6 + $0x30] sm:$0xff]  ;;  %v50_v7 = vld [vmem:[#allocation6 + $0x38] sm:$0xff]  ;;  %v98_v48 = vshrl.u32 %v97_v46, 7  ;;  %s251_s14 = scalar_lea.vmem %s180_s13, 16  ;;  %s255_s15 = scalar_lea.vmem %s180_s13, 32 }
  0x2b   :  { %v51_v8 = vld [vmem:[#allocation6 + $0x40] sm:$0xff]  ;;  %v52_v9 = vld [vmem:[#allocation6 + $0x48] sm:$0xff]  ;;  %v53_v10 = vld [vmem:[#allocation6 + $0x50] sm:$0xff]  ;;  %p252_p2 = scmp.ne.s32.totalorder %s180_s13, %s251_s14  ;;  %p256_p3 = scmp.lt.s32.totalorder %s180_s13, %s180_s13 }
  0x2c   :  { %v54_v11 = vld [vmem:[#allocation6 + $0x58] sm:$0xff]  ;;  %v55_v12 = vld [vmem:[#allocation6 + $0x60] sm:$0xff]  ;;  %v56_v13 = vld [vmem:[#allocation6 + $0x68] sm:$0xff]  ;;  %v99_v49 = vadd.s32 8, %v98_v48  ;;  %v100_v51 = vadd.s32 16, %v98_v48  ;;  %v101_v53 = vadd.s32 24, %v98_v48  ;;  %p257_p4 = scmp.lt.s32.totalorder %s255_s15, %s251_s14 }
  0x2d   :  { %60 = vxpose.xlu0.b32.cont [2/16] (narrow) %v44_v1, 40  ;;  %v57_v14 = vld [vmem:[#allocation6 + $0x70] sm:$0xff]  ;;  %v58_v15 = vld [vmem:[#allocation6 + $0x78] sm:$0xff]  ;;  %v102_v57 = vadd.s32 32, %v98_v48 }
  0x2e   :  { %v189_v50 = vld [vmem:[#allocation3] ss:$0 sm:$0xff]  ;;  %p258_p5 = por %p257_p4, %p256_p3 }
  0x2f   :  { %vm108_vm0 = vcmp.eq.s32.totalorder %v98_v48, %v189_v50  ;;  %vm109_vm1 = vcmp.eq.s32.totalorder %v99_v49, %v189_v50  ;;  %vm110_vm2 = vcmp.eq.s32.totalorder %v100_v51, %v189_v50  ;;  %vm111_vm3 = vcmp.eq.s32.totalorder %v101_v53, %v189_v50 }
  0x30   :  { %vm112_vm4 = vcmp.eq.s32.totalorder %v102_v57, %v189_v50  ;;  %p259_p6 = pnand %p258_p5, %p252_p2 }
  0x31   :  { %61 = vxpose.xlu0.b32.cont [3/16] (narrow) %v45_v2, 40 }
  0x35   :  { %62 = vxpose.xlu0.b32.cont [4/16] (narrow) %v46_v3, 40 }
  0x39   :  { %63 = vxpose.xlu0.b32.cont [5/16] (narrow) %v47_v4, 40 }
  0x3d   :  { %64 = vxpose.xlu0.b32.cont [6/16] (narrow) %v48_v5, 40 }
  0x41   :  { %65 = vxpose.xlu0.b32.cont [7/16] (narrow) %v49_v6, 40 }
  0x45   :  { %66 = vxpose.xlu0.b32.cont [8/16] (narrow) %v50_v7, 40 }
  0x49   :  { %67 = vxpose.xlu0.b32.cont [9/16] (narrow) %v51_v8, 40 }
  0x4d   :  { %68 = vxpose.xlu0.b32.cont [10/16] (narrow) %v52_v9, 40 }
  0x51   :  { %69 = vxpose.xlu0.b32.cont [11/16] (narrow) %v53_v10, 40 }
  0x55   :  { %70 = vxpose.xlu0.b32.cont [12/16] (narrow) %v54_v11, 40 }
  0x59   :  { %71 = vxpose.xlu0.b32.cont [13/16] (narrow) %v55_v12, 40 }
  0x5d   :  { %72 = vxpose.xlu0.b32.cont [14/16] (narrow) %v56_v13, 40 }
  0x61   :  { %73 = vxpose.xlu0.b32.cont [15/16] (narrow) %v57_v14, 40 }
  0x65   :  { %74 = vxpose.xlu0.b32.end [16/16] (narrow) %v58_v15, 40 }
  0xa9   :  { %v75_v16 = vpop.trf.xlu0 }
  0xaa   :  { %v92_v22 = vmul.f32 %v91_v20, %v75_v16 }
  0xac   :  { %v113_v0 = vsel %vm108_vm0, %v92_v22, 0.0 }
  0xad   :  { %v76_v17 = vpop.trf.xlu0 }
  0xae   :  { %v93_v25 = vmul.f32 %v91_v20, %v76_v17 }
  0xb0   :  { %v114_v60 = vsel %vm109_vm1, %v93_v25, 0.0 }
  0xb1   :  { %v77_v18 = vpop.trf.xlu0  ;;  %v118_v3 = vadd.f32 %v114_v60, %v113_v0 }
  0xb2   :  { %v94_v26 = vmul.f32 %v91_v20, %v77_v18 }
  0xb4   :  { %v115_v1 = vsel %vm110_vm2, %v94_v26, 0.0 }
  0xb5   :  { %v78_v19 = vpop.trf.xlu0  ;;  %v119_v7 = vadd.f32 %v118_v3, %v115_v1 }
  0xb6   :  { %v95_v23 = vmul.f32 %v91_v20, %v78_v19 }
  0xb8   :  { %v130_v28 = vmax.f32 %v94_v26, %v95_v23  ;;  %v116_v5 = vsel %vm111_vm3, %v95_v23, 0.0 }
  0xb9   :  { %v79_v21 = vpop.trf.xlu0  ;;  %v120_v11 = vadd.f32 %v119_v7, %v116_v5 }
  0xba   :  { %v96_v24 = vmul.f32 %v91_v20, %v79_v21 }
  0xbc   :  { %v128_v27 = vmax.f32 %v92_v22, %v96_v24  ;;  %v117_v9 = vsel %vm112_vm4, %v96_v24, 0.0 }
  0xbd   :  { %v121_v13 = vadd.f32 %v120_v11, %v117_v9 }
  0xbe   :  { %v129_v29 = vmax.f32 %v128_v27, %v93_v25 }
  0xbf   :  { %v122_v16 = vrot.slane %v121_v13, 4 }
  0xc0   :  { %v131_v30 = vmax.f32 %v129_v29, %v130_v28 }
  0xc1   :  { %v123_v19 = vadd.f32 %v122_v16, %v121_v13 }
  0xc2   :  { %v132_v31 = vrot.slane %v131_v30, 4 }
  0xc3   :  { %v124_v21 = vrot.slane %v123_v19, 2 }
  0xc4   :  { %v133_v32 = vmax.f32 %v131_v30, %v132_v31 }
  0xc6   :  { %v134_v33 = vrot.slane %v133_v32, 2 }
  0xc8   :  { %v135_v34 = vmax.f32 %v133_v32, %v134_v33 }
  0xca   :  { %v136_v35 = vrot.slane %v135_v34, 1 }
  0xcc   :  { %v331_v36 = vmax.f32 %v135_v34, %v136_v35 }
  0xce   :  { %v138_v37 = vsub.f32 %v92_v22, %v331_v36  ;;  %v139_v38 = vsub.f32 %v93_v25, %v331_v36  ;;  %v140_v39 = vsub.f32 %v94_v26, %v331_v36  ;;  %v141_v40 = vsub.f32 %v95_v23, %v331_v36 }
  0xcf   :  { %v142_v41 = vsub.f32 %v96_v24, %v331_v36  ;;  %v125_v22 = vadd.f32 %v124_v21, %v123_v19 }
  0xd0   :  { %v143_v42 = vmul.f32 1.442695, %v138_v37  ;;  %v145_v43 = vmul.f32 1.442695, %v139_v38  ;;  %v147_v44 = vmul.f32 1.442695, %v140_v39 }
  0xd1   :  { %v149_v45 = vmul.f32 1.442695, %v141_v40  ;;  %v151_v47 = vmul.f32 1.442695, %v142_v41  ;;  %v126_v25 = vrot.slane %v125_v22, 1 }
  0xd2   :  { %195 = vpow2.f32 %v143_v42 }
  0xd3   :  { %197 = vpow2.f32 %v145_v43  ;;  %v127_v24 = vadd.f32 %v126_v25, %v125_v22 }
  0xd4   :  { %199 = vpow2.f32 %v147_v44 }
  0xd5   :  { %201 = vpow2.f32 %v149_v45 }
  0xd6   :  { %203 = vpow2.f32 %v151_v47 }
  0xdc   :  { %v196_v52 = vpop.eup %195 }
  0xdd   :  { %v198_v54 = vpop.eup %197  ;;  %v153_v55 = vsel %vm108_vm0, 0.0, %v196_v52 }
  0xde   :  { %v200_v56 = vpop.eup %199  ;;  %v154_v58 = vsel %vm109_vm1, 0.0, %v198_v54 }
  0xdf   :  { %v202_v59 = vpop.eup %201  ;;  %v158_v61 = vadd.f32 %v154_v58, %v153_v55  ;;  %v155_v62 = vsel %vm110_vm2, 0.0, %v200_v56 }
  0xe0   :  { %v204_v63 = vpop.eup %203  ;;  %v156_v4 = vsel %vm111_vm3, 0.0, %v202_v59 }
  0xe1   :  { %v159_v2 = vadd.f32 %v158_v61, %v155_v62  ;;  %v157_v8 = vsel %vm112_vm4, 0.0, %v204_v63 }
  0xe3   :  { %v160_v6 = vadd.f32 %v159_v2, %v156_v4 }
  0xe5   :  { %v161_v10 = vadd.f32 %v160_v6, %v157_v8 }
  0xe7   :  { %v162_v12 = vrot.slane %v161_v10, 4 }
  0xe9   :  { %v163_v14 = vadd.f32 %v162_v12, %v161_v10 }
  0xeb   :  { %v164_v15 = vrot.slane %v163_v14, 2 }
  0xed   :  { %v165_v17 = vadd.f32 %v164_v15, %v163_v14 }
  0xef   :  { %v166_v18 = vrot.slane %v165_v17, 1 }
  0xf1   :  { %v167_v20 = vadd.f32 %v166_v18, %v165_v17 }
  0xf3   :  { %205 = vlog2.f32 %v167_v20 }
  0xfd   :  { %v206_v23 = vpop.eup %205 }
  0xfe   :  { %v169_v26 = vmul.f32 0.6931472, %v206_v23 }
 0x100   :  { %v170_v27 = vadd.f32 %v169_v26, %v331_v36 }
 0x102   :  { %v171_v28 = vsub.f32 %v170_v27, %v127_v24 }
 0x104   :  { %172 = vst [vmem:[#allocation8] sm:$0x1] %v171_v28 }
 0x105   :  { %262 = shalt.err (!%p259_p6)
}
 0x106   :  { %s263_s18 = scalar_lea.hbm %s354_s3, 16 }
 0x107   :  { %p264_p7 = scmp.ne.s32.totalorder %s354_s3, %s263_s18  ;;  %p267_p8 = scmp.lt.u32.totalorder %s263_s18, %s354_s3 }
 0x109   :  { %p269_p9 = pnand %p267_p8, %p264_p7 }
 0x10b   :  { %272 = shalt.err (!%p269_p9)
}
 0x10c   :  { %182 = dma.vmem_to_hbm [thread:$0]  %s180_s13, 16, %s354_s3, [#allocation5]  }
 0x10d   :  { %277 = dma.done.wait [#allocation5], 16  }
 0x10e   :  { %278 = vsyncadd [#allocation5], 4294967280 }
 0x10f   :  { %186 = vsyncpa [#allocation4], 1 }
 0x110   :  { %187 = vsyncpa [#allocation7], 1 }
 0x111   :  { %188 = vsyncpa [#allocation5], 1 }

</bundles_post_ra>
